<compile_context>
chip_gen: v5e
topology: v5e:2x2
jax: 0.10.0
libtpu: 0.0.40
codegen_flags: <defaults>
</compile_context>

<pallas_src>
from functools import partial

import jax
import jax.numpy as jnp
from jax.experimental import pallas as pl
from jax.experimental.pallas import tpu as pltpu

_PACK = 4               # original rows packed per kernel row (12 % 4 == 0 always)
_CHANNELS = 12          # BatchNorm2d(2 * 6) channel count = d*h
_PATTERN_ROWS = 24      # lcm(8-sublane alignment, 3-packed-row channel period)
_MAX_TILE_ROWS = 3072   # packed rows per grid step; multiple of 48 (bf16-safe);
                        # double-buffered f32 x+out footprint ~9.4 MiB


def _round_up(a, b):
    return -(-a // b) * b


def _pokemon_kernel(x_ref, w_ref, b_ref, scale_ref, shift_ref, o_ref):
    # x:(T,4K)  w:(4K,4M) block-diag  b:(1,4M)  scale/shift:(P,4M) with P==T or P|T
    x = x_ref[...].astype(w_ref.dtype)          # in-kernel cast (bf16 matmul path)
    y = jnp.dot(x, w_ref[...], preferred_element_type=jnp.float32)
    y = jnp.maximum(y + b_ref[...], 0.0)        # Linear bias + ReLU (f32)
    # eval-mode Dropout == identity
    t, fm = o_ref.shape
    p = scale_ref.shape[0]
    if p == t:
        # exact-size BN tiles (tiny single-block path)
        y = y * scale_ref[...] + shift_ref[...]
    else:
        # T is a multiple of the 24-row BN channel pattern (asserted in wrapper):
        # broadcast the resident pattern over the T//24 repeats.
        y = (y.reshape(t // p, p, fm) * scale_ref[...][None, :, :]
             + shift_ref[...][None, :, :]).reshape(t, fm)
    o_ref[...] = y.astype(o_ref.dtype)


def prepare_pokemon_params(fc_w, fc_b, bn_gamma, bn_beta, bn_mean, bn_var,
                           eps=1e-5, compute_dtype=None):
    """Hoistable prep (run once per weight update, NOT per forward call)."""
    out_size, _ = fc_w.shape
    wT = jnp.transpose(fc_w).astype(jnp.float32)                     # (K, M)
    w_packed = jnp.kron(jnp.eye(_PACK, dtype=jnp.float32), wT)       # (4K, 4M) block-diag
    if compute_dtype is not None:
        w_packed = w_packed.astype(compute_dtype)                    # resident, tiny
    b_packed = jnp.tile(fc_b.astype(jnp.float32), _PACK).reshape(1, _PACK * out_size)

    # Do NOT fold scale through ReLU into W/bias: gamma (hence scale) may be negative.
    scale_c = (bn_gamma / jnp.sqrt(bn_var + eps)).astype(jnp.float32)  # (12,)
    shift_c = (bn_beta - bn_mean * scale_c).astype(jnp.float32)        # (12,)

    # Resident BN affine pattern: packed row r, slot c -> channel (4r+c) % 12.
    # Period over packed rows is 3; lcm with the 8-sublane constraint -> 24 rows.
    rr = jnp.arange(_PATTERN_ROWS)
    cc = jnp.arange(_PACK)
    ch = (_PACK * rr[:, None] + cc[None, :]) % _CHANNELS              # (24, 4)
    scale_pat = jnp.repeat(scale_c[ch], out_size, axis=1)             # (24, 4M)
    shift_pat = jnp.repeat(shift_c[ch], out_size, axis=1)             # (24, 4M)
    return {"w_packed": w_packed, "b_packed": b_packed,
            "scale_pat": scale_pat, "shift_pat": shift_pat}


@partial(jax.jit, static_argnames=("out_dtype",))
def pokemon_layer_apply(x, w_packed, b_packed, scale_pat, shift_pat, out_dtype=None):
    bs, d, h, k = x.shape
    if d * h != _CHANNELS:
        raise ValueError("BatchNorm2d(12) requires d*h == 12")
    fourm = b_packed.shape[1]
    m = fourm // _PACK
    n_packed = (bs * d * h) // _PACK             # exact: 12 % 4 == 0
    pat_rows = scale_pat.shape[0]                # 24

    out_dtype = x.dtype if out_dtype is None else jnp.dtype(out_dtype)

    # Pure metadata reshape; NO dtype cast here (a wrapper-side cast would add a
    # full extra HBM read+write pass on a memory-bound kernel).
    x_packed = x.reshape(n_packed, _PACK * k)

    # Sublane alignment: 8 rows for 32-bit blocks, 16 for 16-bit; lcm with the
    # 24-row BN channel period -> 24 / 48.
    sub16 = (jnp.dtype(out_dtype).itemsize < 4) or (x.dtype.itemsize < 4)
    align = _PATTERN_ROWS * (2 if sub16 else 1)

    # Tile selection: at least 2 (even) grid steps when possible so v7x's two
    # TensorCores both get work; capped by _MAX_TILE_ROWS for VMEM headroom.
    n_steps = max(2, -(-n_packed // _MAX_TILE_ROWS))
    if n_steps % 2:
        n_steps += 1
    tile = _round_up(-(-n_packed // n_steps), align)

    if tile >= n_packed:
        # Tiny problem: single full-extent block with exact-size BN tiles
        # (blocks equal to the full array dims are always legal).
        tile = n_packed
        reps = -(-n_packed // pat_rows)
        scale_blk = jnp.tile(scale_pat, (reps, 1))[:n_packed]
        shift_blk = jnp.tile(shift_pat, (reps, 1))[:n_packed]
    else:
        # Phase-alignment invariant: tile % 24 == 0 keeps the (4r+c)%12 channel
        # pattern in sync across grid steps (and % 48 when bf16 blocks are used).
        assert tile % pat_rows == 0 and tile % align == 0, (tile, pat_rows, align)
        scale_blk, shift_blk = scale_pat, shift_pat

    p = scale_blk.shape[0]
    grid = (pl.cdiv(n_packed, tile),)

    flops = 2 * n_packed * (_PACK * k) * fourm
    bytes_accessed = (
        x_packed.size * x_packed.dtype.itemsize
        + n_packed * fourm * jnp.dtype(out_dtype).itemsize
        + w_packed.size * w_packed.dtype.itemsize
        + (b_packed.size + scale_blk.size + shift_blk.size) * 4
    )

    out = pl.pallas_call(
        _pokemon_kernel,
        out_shape=jax.ShapeDtypeStruct((n_packed, fourm), out_dtype),
        grid=grid,
        in_specs=[
            pl.BlockSpec((tile, _PACK * k), lambda i: (i, 0)),    # x: streamed
            pl.BlockSpec((_PACK * k, fourm), lambda i: (0, 0)),   # W: resident
            pl.BlockSpec((1, fourm), lambda i: (0, 0)),           # bias: resident
            pl.BlockSpec((p, fourm), lambda i: (0, 0)),           # BN scale pattern: resident
            pl.BlockSpec((p, fourm), lambda i: (0, 0)),           # BN shift pattern: resident
        ],
        out_specs=pl.BlockSpec((tile, fourm), lambda i: (i, 0)),
        compiler_params=pltpu.CompilerParams(
            dimension_semantics=("parallel",),
        ),
        cost_estimate=pl.CostEstimate(flops=flops, transcendentals=0,
                                      bytes_accessed=bytes_accessed),
    )(x_packed, w_packed, b_packed, scale_blk, shift_blk)

    # (n_packed, 4M) row-major == (bs, d, h, M) row-major: metadata reshape only.
    return out.reshape(bs, d, h, m)


def pokemon_layer(x, fc_w, fc_b, bn_gamma, bn_beta, bn_mean, bn_var,
                  eps=1e-5, compute_dtype=None, out_dtype=None):
    """Convenience one-shot wrapper (prepare + apply)."""
    prm = prepare_pokemon_params(fc_w, fc_b, bn_gamma, bn_beta, bn_mean, bn_var,
                                 eps=eps, compute_dtype=compute_dtype)
    return pokemon_layer_apply(x, prm["w_packed"], prm["b_packed"],
                               prm["scale_pat"], prm["shift_pat"],
                               out_dtype=out_dtype)


if __name__ == "__main__":
    def reference(x, fc_w, fc_b, g, b, mu, var, eps=1e-5):
        bs, d, h, _ = x.shape
        y = jnp.maximum(jnp.einsum("bdhk,mk->bdhm", x, fc_w) + fc_b, 0.0)
        m = y.shape[-1]
        y = y.reshape(bs, d * h, 1, m)
        y = (y - mu[None, :, None, None]) / jnp.sqrt(var[None, :, None, None] + eps)
        y = y * g[None, :, None, None] + b[None, :, None, None]
        return y.reshape(bs, d, h, m)

    input_size, output_size = 32, 64
    key = jax.random.PRNGKey(0)
    kw, kb, kg, kbe, km, kv, kx1, kx2 = jax.random.split(key, 8)

    fc_w = jax.random.normal(kw, (output_size, input_size), jnp.float32) * 0.1
    fc_b = jax.random.normal(kb, (output_size,), jnp.float32) * 0.1
    bn_gamma = 1.0 + 0.1 * jax.random.normal(kg, (_CHANNELS,), jnp.float32)
    bn_beta = 0.1 * jax.random.normal(kbe, (_CHANNELS,), jnp.float32)
    bn_mean = 0.1 * jax.random.normal(km, (_CHANNELS,), jnp.float32)
    bn_var = jax.random.uniform(kv, (_CHANNELS,), minval=0.5, maxval=1.5,
                                dtype=jnp.float32)

    # Weight / BN-pattern prep hoisted out of the per-call path (run once).
    params = prepare_pokemon_params(fc_w, fc_b, bn_gamma, bn_beta, bn_mean, bn_var)
    p_args = (params["w_packed"], params["b_packed"],
              params["scale_pat"], params["shift_pat"])

    # Small shape consistent with the module: BatchNorm2d(2*6) forces d*h == 12.
    x_small = jax.random.normal(kx1, (2, 2, 6, input_size), jnp.float32)
    out_small = jax.block_until_ready(pokemon_layer_apply(x_small, *p_args))
    ref_small = reference(x_small, fc_w, fc_b, bn_gamma, bn_beta, bn_mean, bn_var)
    assert out_small.shape == (2, 2, 6, output_size)
    assert jnp.allclose(out_small, ref_small, atol=1e-4, rtol=1e-4)

    # Larger batch: multi-step pipelined grid (2 steps, incl. padded tail block).
    x_big = jax.random.normal(kx2, (260, 2, 6, input_size), jnp.float32)
    out_big = jax.block_until_ready(pokemon_layer_apply(x_big, *p_args))
    ref_big = reference(x_big, fc_w, fc_b, bn_gamma, bn_beta, bn_mean, bn_var)
    assert jnp.allclose(out_big, ref_big, atol=1e-4, rtol=1e-4)

    # bf16 matmul path (v5e: avoids multi-pass f32 MXU); x stays f32 in HBM and
    # is cast inside the kernel. Looser tolerance for bf16 input truncation.
    params_bf = prepare_pokemon_params(fc_w, fc_b, bn_gamma, bn_beta, bn_mean,
                                       bn_var, compute_dtype=jnp.bfloat16)
    out_bf = jax.block_until_ready(pokemon_layer_apply(
        x_big, params_bf["w_packed"], params_bf["b_packed"],
        params_bf["scale_pat"], params_bf["shift_pat"]))
    assert jnp.allclose(out_bf, ref_big, atol=5e-2, rtol=5e-2)

    # bf16 output path (halves writeback bytes on an HBM-bound kernel).
    out_b16 = jax.block_until_ready(
        pokemon_layer_apply(x_big, *p_args, out_dtype=jnp.bfloat16))
    assert out_b16.dtype == jnp.bfloat16
    assert jnp.allclose(out_b16.astype(jnp.float32), ref_big, atol=5e-2, rtol=5e-2)

    print("KERNEL_OK")
</pallas_src>

<mosaic_0001>
module attributes {stable_mosaic.version = 11 : i64} {
  func.func @_pokemon_kernel(%arg0: i32, %arg1: memref<6x128xf32, #tpu.memory_space<vmem>>, %arg2: memref<128x256xf32, #tpu.memory_space<vmem>>, %arg3: memref<1x256xf32, #tpu.memory_space<vmem>>, %arg4: memref<6x256xf32, #tpu.memory_space<vmem>>, %arg5: memref<6x256xf32, #tpu.memory_space<vmem>>, %arg6: memref<6x256xf32, #tpu.memory_space<vmem>>) attributes {dimension_semantics = [#tpu.dimension_semantics<parallel>], iteration_bounds = array<i64: 1>, scalar_prefetch = 0 : i64, scratch_operands = 0 : i64, tpu.core_type = #tpu.core_type<tc>, window_params = [{transform_indices = @transform_0, window_bounds = array<i64: 6, 128>}, {pipeline_mode = #tpu.pipeline_mode<synchronous>, transform_indices = @transform_1, window_bounds = array<i64: 128, 256>}, {pipeline_mode = #tpu.pipeline_mode<synchronous>, transform_indices = @transform_2, window_bounds = array<i64: 1, 256>}, {pipeline_mode = #tpu.pipeline_mode<synchronous>, transform_indices = @transform_3, window_bounds = array<i64: 6, 256>}, {pipeline_mode = #tpu.pipeline_mode<synchronous>, transform_indices = @transform_4, window_bounds = array<i64: 6, 256>}, {transform_indices = @transform_5, window_bounds = array<i64: 6, 256>}]} {
    %c0 = arith.constant 0 : index
    %c0_0 = arith.constant 0 : index
    %0 = vector.load %arg1[%c0, %c0_0] : memref<6x128xf32, #tpu.memory_space<vmem>>, vector<6x128xf32>
    %c0_1 = arith.constant 0 : index
    %c0_2 = arith.constant 0 : index
    %1 = vector.load %arg2[%c0_1, %c0_2] : memref<128x256xf32, #tpu.memory_space<vmem>>, vector<128x256xf32>
    %cst = arith.constant dense<0.000000e+00> : vector<6x256xf32>
    %2 = tpu.matmul %0, %1, %cst {dimension_numbers = #tpu.dot_dimension_numbers<[1], [0], [0], [1], [0, 0, 1, 1], [], []>} : vector<6x128xf32>, vector<128x256xf32>, vector<6x256xf32> -> vector<6x256xf32>
    %c0_3 = arith.constant 0 : index
    %c0_4 = arith.constant 0 : index
    %3 = vector.load %arg3[%c0_3, %c0_4] : memref<1x256xf32, #tpu.memory_space<vmem>>, vector<1x256xf32>
    %4 = vector.broadcast %3 : vector<1x256xf32> to vector<6x256xf32>
    %5 = arith.addf %2, %4 : vector<6x256xf32>
    %cst_5 = arith.constant 0.000000e+00 : f32
    %6 = vector.broadcast %cst_5 : f32 to vector<6x256xf32>
    %7 = arith.maximumf %5, %6 : vector<6x256xf32>
    %c0_6 = arith.constant 0 : index
    %c0_7 = arith.constant 0 : index
    %8 = vector.load %arg4[%c0_6, %c0_7] : memref<6x256xf32, #tpu.memory_space<vmem>>, vector<6x256xf32>
    %9 = arith.mulf %7, %8 : vector<6x256xf32>
    %c0_8 = arith.constant 0 : index
    %c0_9 = arith.constant 0 : index
    %10 = vector.load %arg5[%c0_8, %c0_9] : memref<6x256xf32, #tpu.memory_space<vmem>>, vector<6x256xf32>
    %11 = arith.addf %9, %10 : vector<6x256xf32>
    %c0_10 = arith.constant 0 : index
    %c0_11 = arith.constant 0 : index
    %12 = vector.load %arg6[%c0_10, %c0_11] : memref<6x256xf32, #tpu.memory_space<vmem>>, vector<6x256xf32>
    tpu.vector_store %arg6[%c0_10, %c0_11], %11 {strides = array<i32>} : memref<6x256xf32, #tpu.memory_space<vmem>>, vector<6x256xf32>,
    return
  }
  func.func @transform_0(%arg0: i32) -> (i32, i32) {
    %c0_i32 = arith.constant 0 : i32
    %c0_i32_0 = arith.constant 0 : i32
    return %arg0, %c0_i32 : i32, i32
  }
  func.func @transform_1(%arg0: i32) -> (i32, i32) {
    %c0_i32 = arith.constant 0 : i32
    %c0_i32_0 = arith.constant 0 : i32
    %c0_i32_1 = arith.constant 0 : i32
    return %c0_i32, %c0_i32_0 : i32, i32
  }
  func.func @transform_2(%arg0: i32) -> (i32, i32) {
    %c0_i32 = arith.constant 0 : i32
    %c0_i32_0 = arith.constant 0 : i32
    %c0_i32_1 = arith.constant 0 : i32
    return %c0_i32, %c0_i32_0 : i32, i32
  }
  func.func @transform_3(%arg0: i32) -> (i32, i32) {
    %c0_i32 = arith.constant 0 : i32
    %c0_i32_0 = arith.constant 0 : i32
    %c0_i32_1 = arith.constant 0 : i32
    return %c0_i32, %c0_i32_0 : i32, i32
  }
  func.func @transform_4(%arg0: i32) -> (i32, i32) {
    %c0_i32 = arith.constant 0 : i32
    %c0_i32_0 = arith.constant 0 : i32
    %c0_i32_1 = arith.constant 0 : i32
    return %c0_i32, %c0_i32_0 : i32, i32
  }
  func.func @transform_5(%arg0: i32) -> (i32, i32) {
    %c0_i32 = arith.constant 0 : i32
    %c0_i32_0 = arith.constant 0 : i32
    return %arg0, %c0_i32 : i32, i32
  }
}

</mosaic_0001>

<bundles_post_ra>
// kernel: pokemon_layer_apply.1
= control target key start
LH: loop header
LB: loop body
LE: loop exit
PB: predicated region body
PF: predicated region fallthrough
CT: control target
= control target key end

     0   :  { %10 = vsyncpa [#allocation3], 0  ;;  %s161_s21 = smov [#allocation2]   ;;  %s162_s23 = smov 256   ;;  %s221_s0 = inlined_call_operand.vmem [shape: f32[6,128], index: 0, kind: input, shape index: {}]   ;;  %s222_s1 = inlined_call_operand.hbm [shape: f32[128,256], index: 1, kind: input, shape index: {}]   ;;  %s223_s2 = inlined_call_operand.vmem [shape: f32[1,256], index: 2, kind: input, shape index: {}]   ;;  %s224_s3 = inlined_call_operand.vmem [shape: f32[6,256], index: 3, kind: input, shape index: {}]   ;;  %s225_s4 = inlined_call_operand.vmem [shape: f32[6,256], index: 4, kind: input, shape index: {}]   ;;  %s226_s5 = inlined_call_operand.vmem [shape: f32[6,256], index: 5, kind: output, shape index: {}]  }
   0x1   :  { %s17_s20 = sshll.u32 %s222_s1, 4  ;;  %s19_s22 = sshll.u32 %s161_s21, 4  ;;  %s18_s20 = int_to_ptr.hbm [resolvable:$true] %s17_s20  ;;  %s20_s22 = int_to_ptr.vmem [resolvable:$true] %s19_s22 }
   0x2   :  { %s163_s24 = smov 16  }
   0x3   :  { %25 = dma.hbm_to_vmem [thread:$0]  %s18_s20, 4096, %s20_s22, [#allocation3], %s162_s23, %s162_s23, %s163_s24  }
   0x4   :  { %159 = dma.done.wait [#allocation3], 4096  }
   0x5   :  { %160 = vsyncadd [#allocation3], 4294963200  ;;  %v67_v0 = vld [vmem:[#allocation2 + $0xf0] sm:$0xff]  ;;  %v68_v1 = vld [vmem:[#allocation2 + $0xf8] sm:$0xff] }
   0x6   :  { %v65_v2 = vld [vmem:[#allocation2 + $0xe0] sm:$0xff]  ;;  %75 = vmatpush.msra.mxu0 %v67_v0  ;;  %95 = vmatpush.msra.mxu1 %v68_v1  ;;  %v66_v3 = vld [vmem:[#allocation2 + $0xe8] sm:$0xff]  ;;  %v63_v4 = vld [vmem:[#allocation2 + $0xd0] sm:$0xff] }
   0x7   :  { %v64_v5 = vld [vmem:[#allocation2 + $0xd8] sm:$0xff]  ;;  %v61_v6 = vld [vmem:[#allocation2 + $0xc0] sm:$0xff]  ;;  %v62_v7 = vld [vmem:[#allocation2 + $0xc8] sm:$0xff] }
   0x8   :  { %76 = vmatpush.msra.mxu0 %v65_v2  ;;  %96 = vmatpush.msra.mxu1 %v66_v3  ;;  %v59_v8 = vld [vmem:[#allocation2 + $0xb0] sm:$0xff]  ;;  %v60_v9 = vld [vmem:[#allocation2 + $0xb8] sm:$0xff]  ;;  %v57_v10 = vld [vmem:[#allocation2 + $0xa0] sm:$0xff] }
   0x9   :  { %v58_v11 = vld [vmem:[#allocation2 + $0xa8] sm:$0xff]  ;;  %v55_v12 = vld [vmem:[#allocation2 + $0x90] sm:$0xff]  ;;  %v56_v13 = vld [vmem:[#allocation2 + $0x98] sm:$0xff] }
   0xa   :  { %77 = vmatpush.msra.mxu0 %v63_v4  ;;  %97 = vmatpush.msra.mxu1 %v64_v5  ;;  %v53_v14 = vld [vmem:[#allocation2 + $0x80] sm:$0xff]  ;;  %v54_v15 = vld [vmem:[#allocation2 + $0x88] sm:$0xff]  ;;  %v51_v16 = vld [vmem:[#allocation2 + $0x70] sm:$0xff] }
   0xb   :  { %v52_v17 = vld [vmem:[#allocation2 + $0x78] sm:$0xff]  ;;  %v49_v18 = vld [vmem:[#allocation2 + $0x60] sm:$0xff]  ;;  %v50_v19 = vld [vmem:[#allocation2 + $0x68] sm:$0xff] }
   0xc   :  { %78 = vmatpush.msra.mxu0 %v61_v6  ;;  %98 = vmatpush.msra.mxu1 %v62_v7  ;;  %v47_v20 = vld [vmem:[#allocation2 + $0x50] sm:$0xff]  ;;  %v48_v21 = vld [vmem:[#allocation2 + $0x58] sm:$0xff]  ;;  %v45_v22 = vld [vmem:[#allocation2 + $0x40] sm:$0xff] }
   0xd   :  { %v46_v23 = vld [vmem:[#allocation2 + $0x48] sm:$0xff]  ;;  %v43_v24 = vld [vmem:[#allocation2 + $0x30] sm:$0xff]  ;;  %v44_v25 = vld [vmem:[#allocation2 + $0x38] sm:$0xff] }
   0xe   :  { %79 = vmatpush.msra.mxu0 %v59_v8  ;;  %99 = vmatpush.msra.mxu1 %v60_v9  ;;  %v41_v26 = vld [vmem:[#allocation2 + $0x20] sm:$0xff]  ;;  %v42_v27 = vld [vmem:[#allocation2 + $0x28] sm:$0xff]  ;;  %v39_v28 = vld [vmem:[#allocation2 + $0x10] sm:$0xff] }
   0xf   :  { %v40_v29 = vld [vmem:[#allocation2 + $0x18] sm:$0xff]  ;;  %v37_v30 = vld [vmem:[#allocation2] sm:$0xff]  ;;  %v38_v31 = vld [vmem:[#allocation2 + $0x8] sm:$0xff] }
  0x10   :  { %80 = vmatpush.msra.mxu0 %v57_v10  ;;  %100 = vmatpush.msra.mxu1 %v58_v11  ;;  %v36_v32 = vld [vmem:[%s221_s0] sm:$0x3f]  ;;  %v118_v41 = vld [vmem:[%s224_s3 + $0x8] sm:$0x3f] }
  0x11   :  { %v69_v33 = vld [vmem:[%s223_s2] sm:$0x3]  ;;  %v122_v45 = vld [vmem:[%s225_s4 + $0x8] sm:$0x3f] }
  0x12   :  { %81 = vmatpush.msra.mxu0 %v55_v12  ;;  %101 = vmatpush.msra.mxu1 %v56_v13  ;;  %v71_v34 = vperm.slane %v69_v33, 0  ;;  %v72_v35 = vperm.slane %v69_v33, 1  ;;  %v117_v40 = vld [vmem:[%s224_s3] sm:$0x3f] }
  0x13   :  { %v121_v44 = vld [vmem:[%s225_s4] sm:$0x3f] }
  0x14   :  { %82 = vmatpush.msra.mxu0 %v53_v14  ;;  %102 = vmatpush.msra.mxu1 %v54_v15 }
  0x16   :  { %83 = vmatpush.msra.mxu0 %v51_v16  ;;  %103 = vmatpush.msra.mxu1 %v52_v17 }
  0x18   :  { %84 = vmatpush.msra.mxu0 %v49_v18  ;;  %104 = vmatpush.msra.mxu1 %v50_v19 }
  0x1a   :  { %85 = vmatpush.msra.mxu0 %v47_v20  ;;  %105 = vmatpush.msra.mxu1 %v48_v21 }
  0x1c   :  { %86 = vmatpush.msra.mxu0 %v45_v22  ;;  %106 = vmatpush.msra.mxu1 %v46_v23 }
  0x1e   :  { %87 = vmatpush.msra.mxu0 %v43_v24  ;;  %107 = vmatpush.msra.mxu1 %v44_v25 }
  0x20   :  { %88 = vmatpush.msra.mxu0 %v41_v26  ;;  %108 = vmatpush.msra.mxu1 %v42_v27 }
  0x22   :  { %89 = vmatpush.msra.mxu0 %v39_v28  ;;  %109 = vmatpush.msra.mxu1 %v40_v29 }
  0x24   :  { %90 = vmatpush.msra.mxu0 %v37_v30  ;;  %110 = vmatpush.msra.mxu1 %v38_v31 }
  0x25   :  { %91 = vmatmul.f32.vlgmr.msra.gmra.mxu0 %v36_v32  ;;  %111 = vmatmul.f32.vlgmr.msra.gmra.mxu1 %v36_v32 }
  0xa2   :  { %v92_v36 = vpop.f32.mrf.mxu0  ;;  %v112_v37 = vpop.f32.mrf.mxu1 }
  0xa3   :  { %v93_v38 = vadd.f32 %v92_v36, %v71_v34  ;;  %v113_v39 = vadd.f32 %v112_v37, %v72_v35 }
  0xa5   :  { %v115_v42 = vmax.f32 %v93_v38, 0.0  ;;  %v116_v43 = vmax.f32 %v113_v39, 0.0 }
  0xa7   :  { %v119_v46 = vmul.f32 %v117_v40, %v115_v42  ;;  %v120_v47 = vmul.f32 %v118_v41, %v116_v43 }
  0xa9   :  { %v123_v48 = vadd.f32 %v121_v44, %v119_v46  ;;  %v124_v49 = vadd.f32 %v122_v45, %v120_v47 }
  0xab   :  { %125 = vst [vmem:[%s226_s5] sm:$0x3f] %v123_v48 }
  0xac   :  { %126 = vst [vmem:[%s226_s5 + $0x8] sm:$0x3f] %v124_v49 }
  0xad   :  { %131 = vsyncpa [#allocation3], 1 }

</bundles_post_ra>
